<compile_context>
chip_gen: v7x
topology: tpu7x:2x2x1
jax: 0.10.0
libtpu: 0.0.40
codegen_flags: <defaults>
</compile_context>

<pallas_src>
import jax
import jax.numpy as jnp
from jax import lax
from jax.experimental import pallas as pl
from jax.experimental.pallas import tpu as pltpu


def _round_up(n: int, m: int) -> int:
    return ((n + m - 1) // m) * m


def mlp_kernel(x_ref, w1_ref, b1_ref, w2_ref, b2_ref, w3_ref, b3_ref, o_ref):
    # x tile arrives as [tile_b, D] f32.  Cast on the VPU; NT contraction puts the
    # batch dimension on the lane axis: [H1, D] x [tile_b, D]^T -> [H1, tile_b].
    x_bf = x_ref[...].astype(jnp.bfloat16)
    h1 = lax.dot_general(
        w1_ref[...], x_bf,
        dimension_numbers=(((1,), (1,)), ((), ())),
        preferred_element_type=jnp.float32)
    h1 = jnp.maximum(h1 + b1_ref[...], 0.0)          # bias column broadcasts over lanes

    # fc2: [H2, H1] @ [H1, tile_b] -> [H2, tile_b]  (bf16 operands, f32 accumulation)
    h2 = jnp.dot(w2_ref[...], h1.astype(jnp.bfloat16),
                 preferred_element_type=jnp.float32)
    h2 = jnp.maximum(h2 + b2_ref[...], 0.0)

    # fc3 (output width 1): VPU multiply + sublane reduction instead of a nearly
    # empty MXU push.  Result is a lane-dense [1, tile_b] row.
    out = jnp.sum(h2 * w3_ref[...], axis=0, keepdims=True) + b3_ref[...]
    o_ref[...] = out.astype(o_ref.dtype)


def prepare_params(params):
    """One-time conversion of torch-layout params (w: [out,in], b: [out]) into
    kernel-ready arrays.  Call once and reuse across forward calls."""
    return {
        "w1": params["w1"].astype(jnp.bfloat16),                  # [H1, D]
        "b1": params["b1"].reshape(-1, 1).astype(jnp.float32),    # [H1, 1]
        "w2": params["w2"].astype(jnp.bfloat16),                  # [H2, H1]
        "b2": params["b2"].reshape(-1, 1).astype(jnp.float32),    # [H2, 1]
        "w3": params["w3"].reshape(-1, 1).astype(jnp.float32),    # [H2, 1]
        "b3": params["b3"].reshape(1, 1).astype(jnp.float32),     # [1, 1]
    }


def mlp_forward(x, prep, *, num_steps=1):
    """x: [B, D] float32.  prep: output of prepare_params.  Returns [B, 1] f32."""
    B, D = x.shape
    H1 = prep["w1"].shape[0]
    H2 = prep["w2"].shape[0]

    if num_steps <= 1:
        # Single grid step: block shapes equal full array dims, so no alignment
        # padding of the batch is required at all.
        num_steps = 1
        tile_b = B
        B_pad = B
    else:
        # Multi-step (v7x): output lane tile must be a multiple of 128.
        tile_b = _round_up(pl.cdiv(B, num_steps), 128)
        B_pad = tile_b * num_steps

    x_in = x
    if B_pad != B:
        x_in = jnp.zeros((B_pad, D), x.dtype).at[:B, :].set(x)

    flops = 2 * B_pad * (D * H1 + H1 * H2 + H2)
    bytes_accessed = (
        x_in.size * x_in.dtype.itemsize
        + sum(int(v.size) * v.dtype.itemsize for v in prep.values())
        + B_pad * 4
    )

    out_wide = pl.pallas_call(
        mlp_kernel,
        out_shape=jax.ShapeDtypeStruct((1, B_pad), jnp.float32),
        grid=(num_steps,),
        in_specs=[
            pl.BlockSpec((tile_b, D), lambda i: (i, 0)),   # x tile (batch rows, f32)
            pl.BlockSpec((H1, D), lambda i: (0, 0)),       # W1 (grid-resident)
            pl.BlockSpec((H1, 1), lambda i: (0, 0)),       # b1 column
            pl.BlockSpec((H2, H1), lambda i: (0, 0)),      # W2 (grid-resident)
            pl.BlockSpec((H2, 1), lambda i: (0, 0)),       # b2 column
            pl.BlockSpec((H2, 1), lambda i: (0, 0)),       # w3 column (VPU path)
            pl.BlockSpec((1, 1), lambda i: (0, 0)),        # b3 scalar
        ],
        out_specs=pl.BlockSpec((1, tile_b), lambda i: (0, i)),   # lane-dense row
        compiler_params=pltpu.CompilerParams(
            dimension_semantics=("parallel",),             # lets v7x shard the 2 steps
        ),
        cost_estimate=pl.CostEstimate(
            flops=flops, transcendentals=0, bytes_accessed=bytes_accessed),
    )(x_in, prep["w1"], prep["b1"], prep["w2"], prep["b2"], prep["w3"], prep["b3"])

    return out_wide[0, :B].reshape(B, 1)


def _default_num_steps() -> int:
    """1 grid step on single-TC chips (v5e/v6e); 2 equal steps on v7x (2 TCs)."""
    try:
        kind = jax.devices()[0].device_kind.lower()
    except Exception:
        return 1
    return 2 if "v7" in kind else 1


def init_params(key, input_dim, h1=128, h2=64, out=1):
    """Torch nn.Linear-style init: U(-1/sqrt(fan_in), 1/sqrt(fan_in)); [out, in] layout."""
    ks = jax.random.split(key, 6)

    def lin(kw, kb, fan_in, fan_out):
        bound = 1.0 / jnp.sqrt(float(fan_in))
        w = jax.random.uniform(kw, (fan_out, fan_in), jnp.float32, -bound, bound)
        b = jax.random.uniform(kb, (fan_out,), jnp.float32, -bound, bound)
        return w, b

    w1, b1 = lin(ks[0], ks[1], input_dim, h1)
    w2, b2 = lin(ks[2], ks[3], h1, h2)
    w3, b3 = lin(ks[4], ks[5], h2, out)
    return {"w1": w1, "b1": b1, "w2": w2, "b2": b2, "w3": w3, "b3": b3}


def mlp_reference(x, p):
    """Plain-JAX reference matching the kernel's numerics (bf16 operands, f32 accum)."""
    xb = x.astype(jnp.bfloat16)
    h1 = jnp.dot(xb, p["w1"].astype(jnp.bfloat16).T,
                 preferred_element_type=jnp.float32) + p["b1"][None, :]
    h1 = jnp.maximum(h1, 0.0)
    h2 = jnp.dot(h1.astype(jnp.bfloat16), p["w2"].astype(jnp.bfloat16).T,
                 preferred_element_type=jnp.float32) + p["b2"][None, :]
    h2 = jnp.maximum(h2, 0.0)
    return jnp.dot(h2, p["w3"].T, preferred_element_type=jnp.float32) + p["b3"][None, :]


if __name__ == "__main__":
    key = jax.random.PRNGKey(0)
    k_x, k_p = jax.random.split(key)

    # Small synthetic tabular shapes (post one-hot feature dim ~200).  Batch and
    # feature dims deliberately NOT multiples of 128 to exercise the unaligned path.
    B, INPUT_DIM = 300, 200
    x = jax.random.normal(k_x, (B, INPUT_DIM), dtype=jnp.float32)

    params = init_params(k_p, INPUT_DIM)
    prep = prepare_params(params)          # one-time, cached across forward calls

    y = mlp_forward(x, prep, num_steps=_default_num_steps())
    y = jax.block_until_ready(y)

    y_ref = mlp_reference(x, params)
    assert y.shape == (B, 1)
    max_diff = float(jnp.max(jnp.abs(y - y_ref)))
    assert jnp.allclose(y, y_ref, atol=2e-3, rtol=1e-2), \
        f"mismatch vs reference (max {max_diff})"

    print("KERNEL_OK")
</pallas_src>

<mosaic_0001>
module attributes {stable_mosaic.version = 11 : i64} {
  func.func @mlp_kernel(%arg0: i32, %arg1: memref<300x200xf32, #tpu.memory_space<vmem>>, %arg2: memref<128x200xbf16, #tpu.memory_space<vmem>>, %arg3: memref<128x1xf32, #tpu.memory_space<vmem>>, %arg4: memref<64x128xbf16, #tpu.memory_space<vmem>>, %arg5: memref<64x1xf32, #tpu.memory_space<vmem>>, %arg6: memref<64x1xf32, #tpu.memory_space<vmem>>, %arg7: memref<1x1xf32, #tpu.memory_space<vmem>>, %arg8: memref<1x300xf32, #tpu.memory_space<vmem>>) attributes {dimension_semantics = [#tpu.dimension_semantics<parallel>], iteration_bounds = array<i64: 1>, scalar_prefetch = 0 : i64, scratch_operands = 0 : i64, tpu.core_type = #tpu.core_type<tc>, window_params = [{transform_indices = @transform_0, window_bounds = array<i64: 300, 200>}, {pipeline_mode = #tpu.pipeline_mode<synchronous>, transform_indices = @transform_1, window_bounds = array<i64: 128, 200>}, {pipeline_mode = #tpu.pipeline_mode<synchronous>, transform_indices = @transform_2, window_bounds = array<i64: 128, 1>}, {pipeline_mode = #tpu.pipeline_mode<synchronous>, transform_indices = @transform_3, window_bounds = array<i64: 64, 128>}, {pipeline_mode = #tpu.pipeline_mode<synchronous>, transform_indices = @transform_4, window_bounds = array<i64: 64, 1>}, {pipeline_mode = #tpu.pipeline_mode<synchronous>, transform_indices = @transform_5, window_bounds = array<i64: 64, 1>}, {pipeline_mode = #tpu.pipeline_mode<synchronous>, transform_indices = @transform_6, window_bounds = array<i64: 1, 1>}, {transform_indices = @transform_7, window_bounds = array<i64: 1, 300>}]} {
    %c0 = arith.constant 0 : index
    %c0_0 = arith.constant 0 : index
    %0 = vector.load %arg1[%c0, %c0_0] : memref<300x200xf32, #tpu.memory_space<vmem>>, vector<300x200xf32>
    %1 = arith.truncf %0 : vector<300x200xf32> to vector<300x200xbf16>
    %c0_1 = arith.constant 0 : index
    %c0_2 = arith.constant 0 : index
    %2 = vector.load %arg2[%c0_1, %c0_2] : memref<128x200xbf16, #tpu.memory_space<vmem>>, vector<128x200xbf16>
    %cst = arith.constant dense<0.000000e+00> : vector<128x300xf32>
    %3 = tpu.matmul %2, %1, %cst {dimension_numbers = #tpu.dot_dimension_numbers<[1], [1], [0], [0], [0, 0, 1, 0], [], []>} : vector<128x200xbf16>, vector<300x200xbf16>, vector<128x300xf32> -> vector<128x300xf32>
    %c0_3 = arith.constant 0 : index
    %c0_4 = arith.constant 0 : index
    %4 = vector.load %arg3[%c0_3, %c0_4] : memref<128x1xf32, #tpu.memory_space<vmem>>, vector<128x1xf32>
    %5 = vector.broadcast %4 : vector<128x1xf32> to vector<128x300xf32>
    %6 = arith.addf %3, %5 : vector<128x300xf32>
    %cst_5 = arith.constant 0.000000e+00 : f32
    %7 = vector.broadcast %cst_5 : f32 to vector<128x300xf32>
    %8 = arith.maximumf %6, %7 : vector<128x300xf32>
    %c0_6 = arith.constant 0 : index
    %c0_7 = arith.constant 0 : index
    %9 = vector.load %arg4[%c0_6, %c0_7] : memref<64x128xbf16, #tpu.memory_space<vmem>>, vector<64x128xbf16>
    %10 = arith.truncf %8 : vector<128x300xf32> to vector<128x300xbf16>
    %cst_8 = arith.constant dense<0.000000e+00> : vector<64x300xf32>
    %11 = tpu.matmul %9, %10, %cst_8 {dimension_numbers = #tpu.dot_dimension_numbers<[1], [0], [0], [1], [0, 0, 1, 1], [], []>} : vector<64x128xbf16>, vector<128x300xbf16>, vector<64x300xf32> -> vector<64x300xf32>
    %c0_9 = arith.constant 0 : index
    %c0_10 = arith.constant 0 : index
    %12 = vector.load %arg5[%c0_9, %c0_10] : memref<64x1xf32, #tpu.memory_space<vmem>>, vector<64x1xf32>
    %13 = vector.broadcast %12 : vector<64x1xf32> to vector<64x300xf32>
    %14 = arith.addf %11, %13 : vector<64x300xf32>
    %cst_11 = arith.constant 0.000000e+00 : f32
    %15 = vector.broadcast %cst_11 : f32 to vector<64x300xf32>
    %16 = arith.maximumf %14, %15 : vector<64x300xf32>
    %c0_12 = arith.constant 0 : index
    %c0_13 = arith.constant 0 : index
    %17 = vector.load %arg6[%c0_12, %c0_13] : memref<64x1xf32, #tpu.memory_space<vmem>>, vector<64x1xf32>
    %18 = vector.broadcast %17 : vector<64x1xf32> to vector<64x300xf32>
    %19 = arith.mulf %16, %18 : vector<64x300xf32>
    %cst_14 = arith.constant dense<0.000000e+00> : vector<300xf32>
    %20 = vector.multi_reduction <add>, %19, %cst_14 [0] : vector<64x300xf32> to vector<300xf32>
    %21 = vector.shape_cast %20 : vector<300xf32> to vector<1x300xf32>
    %c0_15 = arith.constant 0 : index
    %c0_16 = arith.constant 0 : index
    %22 = vector.load %arg7[%c0_15, %c0_16] : memref<1x1xf32, #tpu.memory_space<vmem>>, vector<1x1xf32>
    %23 = vector.broadcast %22 : vector<1x1xf32> to vector<1x300xf32>
    %24 = arith.addf %21, %23 : vector<1x300xf32>
    %c0_17 = arith.constant 0 : index
    %c0_18 = arith.constant 0 : index
    %25 = vector.load %arg8[%c0_17, %c0_18] : memref<1x300xf32, #tpu.memory_space<vmem>>, vector<1x300xf32>
    tpu.vector_store %arg8[%c0_17, %c0_18], %24 {strides = array<i32>} : memref<1x300xf32, #tpu.memory_space<vmem>>, vector<1x300xf32>,
    return
  }
  func.func @transform_0(%arg0: i32) -> (i32, i32) {
    %c0_i32 = arith.constant 0 : i32
    %c0_i32_0 = arith.constant 0 : i32
    return %arg0, %c0_i32 : i32, i32
  }
  func.func @transform_1(%arg0: i32) -> (i32, i32) {
    %c0_i32 = arith.constant 0 : i32
    %c0_i32_0 = arith.constant 0 : i32
    %c0_i32_1 = arith.constant 0 : i32
    return %c0_i32, %c0_i32_0 : i32, i32
  }
  func.func @transform_2(%arg0: i32) -> (i32, i32) {
    %c0_i32 = arith.constant 0 : i32
    %c0_i32_0 = arith.constant 0 : i32
    %c0_i32_1 = arith.constant 0 : i32
    return %c0_i32, %c0_i32_0 : i32, i32
  }
  func.func @transform_3(%arg0: i32) -> (i32, i32) {
    %c0_i32 = arith.constant 0 : i32
    %c0_i32_0 = arith.constant 0 : i32
    %c0_i32_1 = arith.constant 0 : i32
    return %c0_i32, %c0_i32_0 : i32, i32
  }
  func.func @transform_4(%arg0: i32) -> (i32, i32) {
    %c0_i32 = arith.constant 0 : i32
    %c0_i32_0 = arith.constant 0 : i32
    %c0_i32_1 = arith.constant 0 : i32
    return %c0_i32, %c0_i32_0 : i32, i32
  }
  func.func @transform_5(%arg0: i32) -> (i32, i32) {
    %c0_i32 = arith.constant 0 : i32
    %c0_i32_0 = arith.constant 0 : i32
    %c0_i32_1 = arith.constant 0 : i32
    return %c0_i32, %c0_i32_0 : i32, i32
  }
  func.func @transform_6(%arg0: i32) -> (i32, i32) {
    %c0_i32 = arith.constant 0 : i32
    %c0_i32_0 = arith.constant 0 : i32
    %c0_i32_1 = arith.constant 0 : i32
    return %c0_i32, %c0_i32_0 : i32, i32
  }
  func.func @transform_7(%arg0: i32) -> (i32, i32) {
    %c0_i32 = arith.constant 0 : i32
    %c0_i32_0 = arith.constant 0 : i32
    return %c0_i32, %arg0 : i32, i32
  }
}

</mosaic_0001>

<bundles_post_ra>
// kernel: tpu_custom_call.1
= control target key start
LH: loop header
LB: loop body
LE: loop exit
PB: predicated region body
PF: predicated region fallthrough
CT: control target
= control target key end

     0   :  { %s2006_s0 = inlined_call_operand.vmem [shape: f32[300,200], index: 0, kind: input, shape index: {}]   ;;  %s2007_s1 = inlined_call_operand.vmem [shape: bf16[128,200], index: 1, kind: input, shape index: {}]   ;;  %s2008_s2 = inlined_call_operand.vmem [shape: f32[128,1], index: 2, kind: input, shape index: {}]   ;;  %s2009_s3 = inlined_call_operand.vmem [shape: bf16[64,128], index: 3, kind: input, shape index: {}]   ;;  %s2010_s4 = inlined_call_operand.vmem [shape: f32[64,1], index: 4, kind: input, shape index: {}]   ;;  %s2011_s5 = inlined_call_operand.vmem [shape: f32[64,1], index: 5, kind: input, shape index: {}]   ;;  %s2012_s6 = inlined_call_operand.<no memory space> [shape: f32[1,1], index: 6, kind: input, shape index: {}]   ;;  %s2013_s7 = inlined_call_operand.hbm [shape: f32[1,300], index: 7, kind: output, shape index: {}]  }
   0x1   :  { %v12_v0 = vstv %s2012_s6 }
   0x2   :  { %13 = vst [vmem:[#allocation2] sm:$0x1] %v12_v0 }
   0x3   :  { %v31_v1 = vld [vmem:[%s2006_s0 + $0x8] sm:$0xff]  ;;  %v33_v2 = vld [vmem:[%s2006_s0 + $0x18] sm:$0xff]  ;;  %vm328_vm0 = vcmask 588800   ;;  %v30_v3 = vld [vmem:[%s2006_s0] sm:$0xff]  ;;  %v1261_v44 = vmov 0  }
   0x4   :  { %v107_v4 = vpack.c.bf16 %v33_v2, %v31_v1  ;;  %v32_v5 = vld [vmem:[%s2006_s0 + $0x10] sm:$0xff]  ;;  %v35_v6 = vld [vmem:[%s2006_s0 + $0x28] sm:$0xff]  ;;  %v37_v7 = vld [vmem:[%s2006_s0 + $0x38] sm:$0xff]  ;;  %1207 = vset.pattern.permute.xlu0 %v1261_v44  ;;  %1208 = vset.pattern.permute.xlu1 %v1261_v44 }
   0x5   :  { %v106_v8 = vpack.c.bf16 %v32_v5, %v30_v3  ;;  %v109_v9 = vpack.c.bf16 %v37_v7, %v35_v6  ;;  %v34_v10 = vld [vmem:[%s2006_s0 + $0x20] sm:$0xff]  ;;  %v36_v11 = vld [vmem:[%s2006_s0 + $0x30] sm:$0xff]  ;;  %v39_v12 = vld [vmem:[%s2006_s0 + $0x48] sm:$0xff] }
   0x6   :  { %1129 = vmatprep.subr.msk.bf16.mxu0 %vm328_vm0, %v107_v4  ;;  %v41_v13 = vld [vmem:[%s2006_s0 + $0x58] sm:$0xff]  ;;  %v108_v14 = vpack.c.bf16 %v36_v11, %v34_v10  ;;  %v95_v15 = vld [vmem:[%s2006_s0 + $0x208] sm:$0xff]  ;;  %v94_v17 = vld [vmem:[%s2006_s0 + $0x200] sm:$0xff] }
   0x7   :  { %411 = vmatpush1.bf16.xpose.msra.mxu0 %v106_v8  ;;  %v97_v16 = vld [vmem:[%s2006_s0 + $0x218] sm:$0xff]  ;;  %v111_v18 = vpack.c.bf16 %v41_v13, %v39_v12  ;;  %v96_v20 = vld [vmem:[%s2006_s0 + $0x210] sm:$0xff]  ;;  %v99_v22 = vld [vmem:[%s2006_s0 + $0x228] sm:$0xff] }
   0x8   :  { %1130 = vmatprep.subr.msk.bf16.mxu0 %vm328_vm0, %v109_v9  ;;  %v139_v19 = vpack.c.bf16 %v97_v16, %v95_v15  ;;  %v138_v21 = vpack.c.bf16 %v96_v20, %v94_v17  ;;  %v101_v23 = vld [vmem:[%s2006_s0 + $0x238] sm:$0xff]  ;;  %v38_v24 = vld [vmem:[%s2006_s0 + $0x40] sm:$0xff]  ;;  %v40_v25 = vld [vmem:[%s2006_s0 + $0x50] sm:$0xff] }
   0x9   :  { %v141_v26 = vpack.c.bf16 %v101_v23, %v99_v22  ;;  %v43_v27 = vld [vmem:[%s2006_s0 + $0x68] sm:$0xff]  ;;  %v98_v28 = vld [vmem:[%s2006_s0 + $0x220] sm:$0xff]  ;;  %v100_v29 = vld [vmem:[%s2006_s0 + $0x230] sm:$0xff]  ;;  %v110_v33 = vpack.c.bf16 %v40_v25, %v38_v24 }
   0xa   :  { %1153 = vmatprep.subr.msk.bf16.mxu1 %vm328_vm0, %v139_v19  ;;  %v45_v30 = vld [vmem:[%s2006_s0 + $0x78] sm:$0xff]  ;;  %v103_v31 = vld [vmem:[%s2006_s0 + $0x248] sm:$0xff]  ;;  %v140_v34 = vpack.c.bf16 %v100_v29, %v98_v28  ;;  %v42_v38 = vld [vmem:[%s2006_s0 + $0x60] sm:$0xff] }
   0xb   :  { %524 = vmatpush1.bf16.xpose.msra.mxu1 %v138_v21  ;;  %v105_v32 = vld [vmem:[%s2006_s0 + $0x258] sm:$0xf]  ;;  %v113_v35 = vpack.c.bf16 %v45_v30, %v43_v27  ;;  %v1211_v37 = vld [vmem:[%s2007_s1 + $0x4] ss:$8 sps:$4 sm:$0xff]   ;;  %v44_v39 = vld [vmem:[%s2006_s0 + $0x70] sm:$0xff] }
   0xc   :  { %1154 = vmatprep.subr.msk.bf16.mxu1 %vm328_vm0, %v141_v26  ;;  %v143_v36 = vpack.c.bf16 %v105_v32, %v103_v31  ;;  %1156 = vmatprep.mubr.msk.bf16.mxu1 %vm328_vm0, %v1211_v37  ;;  %v102_v40 = vld [vmem:[%s2006_s0 + $0x240] sm:$0xff]  ;;  %v104_v41 = vld [vmem:[%s2006_s0 + $0x250] sm:$0xf]  ;;  %v47_v42 = vld [vmem:[%s2006_s0 + $0x88] sm:$0xff]  ;;  %v112_v45 = vpack.c.bf16 %v44_v39, %v42_v38 }
   0xd   :  { %1145 = vmatprep.mubr.msk.bf16.mxu0 %vm328_vm0, %v1211_v37  ;;  %v49_v43 = vld [vmem:[%s2006_s0 + $0x98] sm:$0xff]  ;;  %v142_v46 = vpack.c.bf16 %v104_v41, %v102_v40  ;;  %v46_v48 = vld [vmem:[%s2006_s0 + $0x80] sm:$0xff]  ;;  %v48_v49 = vld [vmem:[%s2006_s0 + $0x90] sm:$0xff] }
   0xe   :  { %v115_v47 = vpack.c.bf16 %v49_v43, %v47_v42  ;;  %v51_v50 = vld [vmem:[%s2006_s0 + $0xa8] sm:$0xff]  ;;  %v53_v51 = vld [vmem:[%s2006_s0 + $0xb8] sm:$0xff]  ;;  %v114_v53 = vpack.c.bf16 %v48_v49, %v46_v48  ;;  %v50_v56 = vld [vmem:[%s2006_s0 + $0xa0] sm:$0xff] }
   0xf   :  { %413 = vmatpush1.bf16.xpose.msra.mxu0 %v108_v14  ;;  %v1427_v52 = vld [vmem:[%s2007_s1] ss:$8 sps:$4 sm:$0xff]   ;;  %v1432_v54 = vld [vmem:[%s2007_s1 + $0x14] ss:$8 sps:$4 sm:$0xff]   ;;  %v117_v55 = vpack.c.bf16 %v53_v51, %v51_v50  ;;  %v1456_v61 = vld [vmem:[%s2007_s1 + $0x10] ss:$8 sps:$4 sm:$0xff]  }
  0x10   :  { %1131 = vmatprep.subr.msk.bf16.mxu0 %vm328_vm0, %v111_v18  ;;  %v52_v57 = vld [vmem:[%s2006_s0 + $0xb0] sm:$0xff]  ;;  %v55_v58 = vld [vmem:[%s2006_s0 + $0xc8] sm:$0xff]  ;;  %v160_v59 = vld [vmem:[%s2008_s2] sm:$0xff] }
  0x11   :  { %v57_v60 = vld [vmem:[%s2006_s0 + $0xd8] sm:$0xff]  ;;  %178 = vperm.xlu0 %1207, %v160_v59   ;;  %v162_v62 = vld [vmem:[%s2008_s2 + $0x10] sm:$0xff]  ;;  %v1464_v63 = vld [vmem:[%s2007_s1 + $0x24] ss:$8 sps:$4 sm:$0xff]   ;;  %v116_v2 = vpack.c.bf16 %v52_v57, %v50_v56 }
  0x12   :  { %v161_v0 = vld [vmem:[%s2008_s2 + $0x8] sm:$0xff]  ;;  %188 = vperm.xlu1 %1208, %v162_v62   ;;  %v163_v1 = vld [vmem:[%s2008_s2 + $0x18] sm:$0xff]  ;;  %v119_v3 = vpack.c.bf16 %v57_v60, %v55_v58 }
  0x13   :  { %526 = vmatpush1.bf16.xpose.msra.mxu1 %v140_v34 }
  0x14   :  { %1155 = vmatprep.subr.msk.bf16.mxu1 %vm328_vm0, %v143_v36 }
  0x15   :  { %183 = vperm.xlu0 %1207, %v161_v0  }
  0x17   :  { %415 = vmatpush1.bf16.xpose.msra.mxu0 %v110_v33 }
  0x18   :  { %1132 = vmatprep.subr.msk.bf16.mxu0 %vm328_vm0, %v113_v35 }
  0x1b   :  { %528 = vmatpush1.bf16.xpose.msra.mxu1 %v142_v46 }
  0x1f   :  { %417 = vmatpush1.bf16.xpose.msra.mxu0 %v112_v45 }
  0x20   :  { %1133 = vmatprep.subr.msk.bf16.mxu0 %vm328_vm0, %v115_v47 }
  0x22   :  { %556 = vmatmul.mubr.bf16.vlgmr.msra.gmra.mrb[0].mxu1 %v1427_v52 }
  0x23   :  { %1157 = vmatprep.mubr.msk.bf16.mxu1 %vm328_vm0, %v1432_v54 }
  0x27   :  { %419 = vmatpush1.bf16.xpose.msra.mxu0 %v114_v53 }
  0x28   :  { %1134 = vmatprep.subr.msk.bf16.mxu0 %vm328_vm0, %v117_v55 }
  0x29   :  { %14 = vsyncpa [#allocation4], 0  ;;  %v164_v4 = vld [vmem:[%s2008_s2 + $0x20] sm:$0xff]  ;;  %193 = vperm.xlu1 %1208, %v163_v1   ;;  %v165_v5 = vld [vmem:[%s2008_s2 + $0x28] sm:$0xff]  ;;  %vm1032_vm1 = vcmask 359424  }
  0x2a   :  { %564 = vmatmul.mubr.bf16.gmra.mrb[4].mxu1 %v1456_v61  ;;  %v54_v6 = vld [vmem:[%s2006_s0 + $0xc0] sm:$0xff]  ;;  %v56_v7 = vld [vmem:[%s2006_s0 + $0xd0] sm:$0xff]  ;;  %198 = vperm.xlu0 %1207, %v164_v4   ;;  %v59_v8 = vld [vmem:[%s2006_s0 + $0xe8] sm:$0xff] }
  0x2b   :  { %1158 = vmatprep.mubr.msk.bf16.mxu1 %vm328_vm0, %v1464_v63  ;;  %v61_v9 = vld [vmem:[%s2006_s0 + $0xf8] sm:$0xff]  ;;  %v166_v10 = vld [vmem:[%s2008_s2 + $0x30] sm:$0xff]  ;;  %v1500_v11 = vld [vmem:[%s2007_s1 + $0x20] ss:$8 sps:$4 sm:$0xff]   ;;  %v118_v13 = vpack.c.bf16 %v56_v7, %v54_v6 }
  0x2c   :  { %v167_v12 = vld [vmem:[%s2008_s2 + $0x38] sm:$0xff]  ;;  %v121_v15 = vpack.c.bf16 %v61_v9, %v59_v8  ;;  %v168_v16 = vld [vmem:[%s2008_s2 + $0x40] sm:$0xff]  ;;  %v169_v17 = vld [vmem:[%s2008_s2 + $0x48] sm:$0xff] }
  0x2d   :  { %203 = vperm.xlu1 %1208, %v165_v5   ;;  %v1508_v14 = vld [vmem:[%s2007_s1 + $0x34] ss:$8 sps:$4 sm:$0xff]   ;;  %v58_v18 = vld [vmem:[%s2006_s0 + $0xe0] sm:$0xff]  ;;  %v63_v20 = vld [vmem:[%s2006_s0 + $0x108] sm:$0xff] }
  0x2e   :  { %208 = vperm.xlu0 %1207, %v166_v10   ;;  %v60_v19 = vld [vmem:[%s2006_s0 + $0xf0] sm:$0xff]  ;;  %v65_v21 = vld [vmem:[%s2006_s0 + $0x118] sm:$0xff]  ;;  %v1546_v26 = vld [vmem:[%s2007_s1 + $0x44] ss:$8 sps:$4 sm:$0xff]  }
  0x2f   :  { %421 = vmatpush1.bf16.xpose.msra.mxu0 %v116_v2  ;;  %v170_v22 = vld [vmem:[%s2008_s2 + $0x50] sm:$0xff]  ;;  %v171_v24 = vld [vmem:[%s2008_s2 + $0x58] sm:$0xff]  ;;  %v120_v25 = vpack.c.bf16 %v60_v19, %v58_v18  ;;  %v123_v27 = vpack.c.bf16 %v65_v21, %v63_v20  ;;  %v172_v28 = vld [vmem:[%s2008_s2 + $0x60] sm:$0xff] }
  0x30   :  { %1135 = vmatprep.subr.msk.bf16.mxu0 %vm328_vm0, %v119_v3  ;;  %v1538_v23 = vld [vmem:[%s2007_s1 + $0x30] ss:$8 sps:$4 sm:$0xff]   ;;  %v173_v29 = vld [vmem:[%s2008_s2 + $0x68] sm:$0xff]  ;;  %v62_v30 = vld [vmem:[%s2006_s0 + $0x100] sm:$0xff] }
  0x31   :  { %213 = vperm.xlu1 %1208, %v167_v12   ;;  %v64_v31 = vld [vmem:[%s2006_s0 + $0x110] sm:$0xff]  ;;  %v67_v32 = vld [vmem:[%s2006_s0 + $0x128] sm:$0xff]  ;;  %v69_v33 = vld [vmem:[%s2006_s0 + $0x138] sm:$0xff] }
  0x32   :  { %572 = vmatmul.mubr.bf16.gmra.mrb[8].mxu1 %v1500_v11  ;;  %218 = vperm.xlu0 %1207, %v168_v16   ;;  %v174_v34 = vld [vmem:[%s2008_s2 + $0x70] sm:$0xff]  ;;  %v1576_v35 = vld [vmem:[%s2007_s1 + $0x40] ss:$8 sps:$4 sm:$0xff]   ;;  %v175_v36 = vld [vmem:[%s2008_s2 + $0x78] sm:$0xff]  ;;  %v122_v37 = vpack.c.bf16 %v64_v31, %v62_v30  ;;  %v125_v39 = vpack.c.bf16 %v69_v33, %v67_v32 }
  0x33   :  { %1159 = vmatprep.mubr.msk.bf16.mxu1 %vm328_vm0, %v1508_v14  ;;  %v1584_v38 = vld [vmem:[%s2007_s1 + $0x54] ss:$8 sps:$4 sm:$0xff]   ;;  %v700_v40 = vld [vmem:[%s2010_s4] sm:$0xff]  ;;  %v701_v41 = vld [vmem:[%s2010_s4 + $0x8] sm:$0xff] }
  0x34   :  { %v66_v42 = vld [vmem:[%s2006_s0 + $0x120] sm:$0xff]  ;;  %v68_v43 = vld [vmem:[%s2006_s0 + $0x130] sm:$0xff]  ;;  %v71_v45 = vld [vmem:[%s2006_s0 + $0x148] sm:$0xff] }
  0x35   :  { %223 = vperm.xlu1 %1208, %v169_v17   ;;  %v73_v46 = vld [vmem:[%s2006_s0 + $0x158] sm:$0xff]  ;;  %v702_v47 = vld [vmem:[%s2010_s4 + $0x10] sm:$0xff]  ;;  %v124_v50 = vpack.c.bf16 %v68_v43, %v66_v42  ;;  %v1622_v51 = vld [vmem:[%s2007_s1 + $0x64] ss:$8 sps:$4 sm:$0xff]  }
  0x36   :  { %228 = vperm.xlu0 %1207, %v170_v22   ;;  %v1614_v48 = vld [vmem:[%s2007_s1 + $0x50] ss:$8 sps:$4 sm:$0xff]   ;;  %v127_v53 = vpack.c.bf16 %v73_v46, %v71_v45  ;;  %v934_v55 = vld [vmem:[%s2011_s5] sm:$0xff]  ;;  %v935_v56 = vld [vmem:[%s2011_s5 + $0x8] sm:$0xff] }
  0x37   :  { %423 = vmatpush1.bf16.xpose.msra.mxu0 %v118_v13  ;;  %v703_v49 = vld [vmem:[%s2010_s4 + $0x18] sm:$0xff]  ;;  %v70_v57 = vld [vmem:[%s2006_s0 + $0x140] sm:$0xff]  ;;  %v72_v58 = vld [vmem:[%s2006_s0 + $0x150] sm:$0xff] }
  0x38   :  { %1136 = vmatprep.subr.msk.bf16.mxu0 %vm328_vm0, %v121_v15  ;;  %v75_v59 = vld [vmem:[%s2006_s0 + $0x168] sm:$0xff]  ;;  %v77_v60 = vld [vmem:[%s2006_s0 + $0x178] sm:$0xff]  ;;  %v704_v62 = vld [vmem:[%s2010_s4 + $0x20] sm:$0xff]  ;;  %v126_v2 = vpack.c.bf16 %v72_v58, %v70_v57 }
  0x39   :  { %233 = vperm.xlu1 %1208, %v171_v24   ;;  %v1652_v0 = vld [vmem:[%s2007_s1 + $0x60] ss:$8 sps:$4 sm:$0xff]   ;;  %v936_v1 = vld [vmem:[%s2011_s5 + $0x10] sm:$0xff]  ;;  %v129_v4 = vpack.c.bf16 %v77_v60, %v75_v59  ;;  %v937_v6 = vld [vmem:[%s2011_s5 + $0x18] sm:$0xff] }
  0x3a   :  { %580 = vmatmul.mubr.bf16.gmra.mrb[12].mxu1 %v1538_v23  ;;  %238 = vperm.xlu0 %1207, %v172_v28   ;;  %v1660_v3 = vld [vmem:[%s2007_s1 + $0x74] ss:$8 sps:$4 sm:$0xff]   ;;  %v705_v5 = vld [vmem:[%s2010_s4 + $0x28] sm:$0xff]  ;;  %v74_v7 = vld [vmem:[%s2006_s0 + $0x160] sm:$0xff] }
  0x3b   :  { %1160 = vmatprep.mubr.msk.bf16.mxu1 %vm328_vm0, %v1546_v26  ;;  %v76_v8 = vld [vmem:[%s2006_s0 + $0x170] sm:$0xff]  ;;  %v79_v9 = vld [vmem:[%s2006_s0 + $0x188] sm:$0xff]  ;;  %v81_v10 = vld [vmem:[%s2006_s0 + $0x198] sm:$0xff] }
  0x3c   :  { %v706_v12 = vld [vmem:[%s2010_s4 + $0x30] sm:$0xff]  ;;  %v938_v15 = vld [vmem:[%s2011_s5 + $0x20] sm:$0xff]  ;;  %v128_v16 = vpack.c.bf16 %v76_v8, %v74_v7  ;;  %v131_v17 = vpack.c.bf16 %v81_v10, %v79_v9  ;;  %v707_v18 = vld [vmem:[%s2010_s4 + $0x38] sm:$0xff] }
  0x3d   :  { %243 = vperm.xlu1 %1208, %v173_v29   ;;  %v1232_v13 = vld [vmem:[%s2007_s1 + $0x70] ss:$8 sps:$4 sm:$0xff]   ;;  %v939_v19 = vld [vmem:[%s2011_s5 + $0x28] sm:$0xff]  ;;  %v78_v20 = vld [vmem:[%s2006_s0 + $0x180] sm:$0xff] }
  0x3e   :  { %248 = vperm.xlu0 %1207, %v174_v34   ;;  %v80_v21 = vld [vmem:[%s2006_s0 + $0x190] sm:$0xff]  ;;  %v83_v22 = vld [vmem:[%s2006_s0 + $0x1a8] sm:$0xff]  ;;  %v85_v24 = vld [vmem:[%s2006_s0 + $0x1b8] sm:$0xff] }
  0x3f   :  { %425 = vmatpush1.bf16.xpose.msra.mxu0 %v120_v25  ;;  %v940_v25 = vld [vmem:[%s2011_s5 + $0x30] sm:$0xff]  ;;  %v130_v28 = vpack.c.bf16 %v80_v21, %v78_v20  ;;  %v133_v29 = vpack.c.bf16 %v85_v24, %v83_v22  ;;  %v1054_v30 = vld [vmem:[#allocation2] sm:$0x1]  ;;  %v87_v33 = vld [vmem:[%s2006_s0 + $0x1c8] sm:$0xff] }
  0x40   :  { %1137 = vmatprep.subr.msk.bf16.mxu0 %vm328_vm0, %v123_v27  ;;  %v941_v27 = vld [vmem:[%s2011_s5 + $0x38] sm:$0xff]  ;;  %v82_v31 = vld [vmem:[%s2006_s0 + $0x1a0] sm:$0xff]  ;;  %v84_v32 = vld [vmem:[%s2006_s0 + $0x1b0] sm:$0xff] }
  0x41   :  { %253 = vperm.xlu1 %1208, %v175_v36   ;;  %v89_v34 = vld [vmem:[%s2006_s0 + $0x1d8] sm:$0xff]  ;;  %v132_v36 = vpack.c.bf16 %v84_v32, %v82_v31  ;;  %v90_v46 = vld [vmem:[%s2006_s0 + $0x1e0] sm:$0xff] }
  0x42   :  { %588 = vmatmul.mubr.bf16.gmra.mrb[16].mxu1 %v1576_v35  ;;  %710 = vperm.xlu0 %1207, %v700_v40   ;;  %v88_v40 = vld [vmem:[%s2006_s0 + $0x1d0] sm:$0xff]  ;;  %v93_v42 = vld [vmem:[%s2006_s0 + $0x1f8] sm:$0xff] }
  0x43   :  { %1161 = vmatprep.mubr.msk.bf16.mxu1 %vm328_vm0, %v1584_v38 }
  0x45   :  { %715 = vperm.xlu1 %1208, %v701_v41   ;;  %v91_v41 = vld [vmem:[%s2006_s0 + $0x1e8] sm:$0xff] }
  0x46   :  { %720 = vperm.xlu0 %1207, %v702_v47   ;;  %v137_v45 = vpack.c.bf16 %v93_v42, %v91_v41  ;;  %v92_v47 = vld [vmem:[%s2006_s0 + $0x1f0] sm:$0xff] }
  0x47   :  { %427 = vmatpush1.bf16.xpose.msra.mxu0 %v122_v37  ;;  %v135_v37 = vpack.c.bf16 %v89_v34, %v87_v33 }
  0x48   :  { %1138 = vmatprep.subr.msk.bf16.mxu0 %vm328_vm0, %v125_v39  ;;  %v86_v39 = vld [vmem:[%s2006_s0 + $0x1c0] sm:$0xff] }
  0x49   :  { %725 = vperm.xlu1 %1208, %v703_v49   ;;  %v134_v43 = vpack.c.bf16 %v88_v40, %v86_v39  ;;  %v136_v49 = vpack.c.bf16 %v92_v47, %v90_v46 }
  0x4a   :  { %596 = vmatmul.mubr.bf16.gmra.mrb[20].mxu1 %v1614_v48  ;;  %944 = vperm.xlu0 %1207, %v934_v55  }
  0x4b   :  { %1162 = vmatprep.mubr.msk.bf16.mxu1 %vm328_vm0, %v1622_v51 }
  0x4d   :  { %949 = vperm.xlu1 %1208, %v935_v56  }
  0x4e   :  { %730 = vperm.xlu0 %1207, %v704_v62  }
  0x4f   :  { %429 = vmatpush1.bf16.xpose.msra.mxu0 %v124_v50 }
  0x50   :  { %1139 = vmatprep.subr.msk.bf16.mxu0 %vm328_vm0, %v127_v53 }
  0x51   :  { %954 = vperm.xlu1 %1208, %v936_v1  }
  0x52   :  { %604 = vmatmul.mubr.bf16.gmra.mrb[24].mxu1 %v1652_v0  ;;  %735 = vperm.xlu0 %1207, %v705_v5  }
  0x53   :  { %1163 = vmatprep.mubr.msk.bf16.mxu1 %vm328_vm0, %v1660_v3 }
  0x55   :  { %959 = vperm.xlu1 %1208, %v937_v6  }
  0x56   :  { %740 = vperm.xlu0 %1207, %v706_v12  }
  0x57   :  { %431 = vmatpush1.bf16.xpose.msra.mxu0 %v126_v2 }
  0x58   :  { %1140 = vmatprep.subr.msk.bf16.mxu0 %vm328_vm0, %v129_v4 }
  0x59   :  { %964 = vperm.xlu1 %1208, %v938_v15  }
  0x5a   :  { %612 = vmatmul.mubr.bf16.gmra.mrb[28].mxu1 %v1232_v13  ;;  %745 = vperm.xlu0 %1207, %v707_v18  }
  0x5b   :  { %804 = vmatprep.mubr.bf16.mxu1 %v1261_v44 }
  0x5d   :  { %969 = vperm.xlu1 %1208, %v939_v19  }
  0x5e   :  { %974 = vperm.xlu0 %1207, %v940_v25  }
  0x5f   :  { %433 = vmatpush1.bf16.xpose.msra.mxu0 %v128_v16 }
  0x60   :  { %1141 = vmatprep.subr.msk.bf16.mxu0 %vm328_vm0, %v131_v17 }
  0x61   :  { %979 = vperm.xlu1 %1208, %v941_v27  }
  0x62   :  { %1057 = vperm.xlu0 %1207, %v1054_v30  }
  0x67   :  { %435 = vmatpush1.bf16.xpose.msra.mxu0 %v130_v28 }
  0x68   :  { %1142 = vmatprep.subr.msk.bf16.mxu0 %vm328_vm0, %v133_v29 }
  0x6f   :  { %437 = vmatpush1.bf16.xpose.msra.mxu0 %v132_v36 }
  0x70   :  { %1143 = vmatprep.subr.msk.bf16.mxu0 %vm328_vm0, %v135_v37 }
  0x77   :  { %439 = vmatpush1.bf16.xpose.msra.mxu0 %v134_v43 }
  0x78   :  { %1144 = vmatprep.subr.msk.bf16.mxu0 %vm328_vm0, %v137_v45 }
  0x7f   :  { %441 = vmatpush1.bf16.xpose.msra.mxu0 %v136_v49 }
  0x86   :  { %443 = vmatmul.mubr.bf16.vlgmr.msra.gmra.mrb[0].mxu0 %v1427_v52 }
  0x87   :  { %1146 = vmatprep.mubr.msk.bf16.mxu0 %vm328_vm0, %v1432_v54 }
  0x8e   :  { %453 = vmatmul.mubr.bf16.gmra.mrb[4].mxu0 %v1456_v61 }
  0x8f   :  { %1147 = vmatprep.mubr.msk.bf16.mxu0 %vm328_vm0, %v1464_v63 }
  0x90   :  { %v1773_v52 = vpop.permute.xlu0 %178 }
  0x96   :  { %463 = vmatmul.mubr.bf16.gmra.mrb[8].mxu0 %v1500_v11  ;;  %v1776_v11 = vpop.permute.xlu0 %183 }
  0x97   :  { %1148 = vmatprep.mubr.msk.bf16.mxu0 %vm328_vm0, %v1508_v14 }
  0x9e   :  { %473 = vmatmul.mubr.bf16.gmra.mrb[12].mxu0 %v1538_v23 }
  0x9f   :  { %1149 = vmatprep.mubr.msk.bf16.mxu0 %vm328_vm0, %v1546_v26 }
  0xa6   :  { %483 = vmatmul.mubr.bf16.gmra.mrb[16].mxu0 %v1576_v35 }
  0xa7   :  { %1150 = vmatprep.mubr.msk.bf16.mxu0 %vm328_vm0, %v1584_v38  ;;  %v1779_v38 = vpop.permute.xlu1 %188 }
  0xa9   :  { %v1789_v1 = vpop.permute.xlu0 %198 }
  0xab   :  { %v1784_v56 = vpop.permute.xlu1 %193 }
  0xae   :  { %493 = vmatmul.mubr.bf16.gmra.mrb[20].mxu0 %v1614_v48 }
  0xaf   :  { %1151 = vmatprep.mubr.msk.bf16.mxu0 %vm328_vm0, %v1622_v51  ;;  %v1792_v5 = vpop.permute.xlu1 %203 }
  0xb3   :  { %v1800_v18 = vpop.permute.xlu1 %213 }
  0xb6   :  { %503 = vmatmul.mubr.bf16.gmra.mrb[24].mxu0 %v1652_v0 }
  0xb7   :  { %1152 = vmatprep.mubr.msk.bf16.mxu0 %vm328_vm0, %v1660_v3  ;;  %v1808_v31 = vpop.permute.xlu1 %223 }
  0xbb   :  { %v1816_v45 = vpop.permute.xlu1 %233 }
  0xbe   :  { %513 = vmatmul.mubr.bf16.gmra.mrb[28].mxu0 %v1232_v13  ;;  %v1797_v13 = vpop.permute.xlu0 %208 }
  0xc2   :  { %v1805_v27 = vpop.permute.xlu0 %218 }
  0xc6   :  { %v1813_v40 = vpop.permute.xlu0 %228 }
  0xf5   :  { %v557_v54 = vpop.f32.mrb[0].mxu1 }
  0xf6   :  { %v558_v61 = vadd.f32 %v557_v54, %v1773_v52  ;;  %v559_v63 = vpop.f32.mrb[1].mxu1 }
  0xf7   :  { %v560_v14 = vpop.f32.mrb[2].mxu1 }
  0xf8   :  { %v622_v23 = vmax.f32 %v558_v61, 0.0  ;;  %v561_v26 = vadd.f32 %v560_v14, %v1776_v11  ;;  %v562_v35 = vpop.f32.mrb[3].mxu1  ;;  %v1821_v14 = vpop.permute.xlu0 %238 }
  0xfa   :  { %v625_v48 = vmax.f32 %v561_v26, 0.0 }
  0xfc   :  { %v1781_v50 = vpack.c.bf16 %v625_v48, %v622_v23  ;;  %v1824_v48 = vpop.permute.xlu1 %243 }
  0xfd   :  { %v565_v51 = vpop.f32.mrb[4].mxu1 }
  0xfe   :  { %v566_v53 = vadd.f32 %v565_v51, %v1779_v38  ;;  %v567_v55 = vpop.f32.mrb[5].mxu1 }
  0xff   :  { %v568_v57 = vpop.f32.mrb[6].mxu1 }
 0x100   :  { %v628_v58 = vmax.f32 %v566_v53, 0.0  ;;  %v569_v59 = vadd.f32 %v568_v57, %v1784_v56  ;;  %v570_v60 = vpop.f32.mrb[7].mxu1 }
 0x101   :  { %v1829_v60 = vpop.permute.xlu0 %248 }
 0x102   :  { %v631_v62 = vmax.f32 %v569_v59, 0.0 }
 0x104   :  { %v1787_v0 = vpack.c.bf16 %v631_v62, %v628_v58 }
 0x105   :  { %v573_v2 = vpop.f32.mrb[8].mxu1 }
 0x106   :  { %v574_v3 = vadd.f32 %v573_v2, %v1789_v1  ;;  %v575_v4 = vpop.f32.mrb[9].mxu1 }
 0x107   :  { %v576_v6 = vpop.f32.mrb[10].mxu1  ;;  %v1832_v4 = vpop.permute.xlu1 %253 }
 0x108   :  { %v634_v7 = vmax.f32 %v574_v3, 0.0  ;;  %v577_v8 = vadd.f32 %v576_v6, %v1792_v5  ;;  %v578_v9 = vpop.f32.mrb[11].mxu1 }
 0x10a   :  { %v637_v10 = vmax.f32 %v577_v8, 0.0 }
 0x10c   :  { %v1795_v12 = vpack.c.bf16 %v637_v10, %v634_v7 }
 0x10d   :  { %v581_v15 = vpop.f32.mrb[12].mxu1 }
 0x10e   :  { %v582_v16 = vadd.f32 %v581_v15, %v1797_v13  ;;  %v583_v17 = vpop.f32.mrb[13].mxu1 }
 0x10f   :  { %v584_v19 = vpop.f32.mrb[14].mxu1 }
 0x110   :  { %v640_v20 = vmax.f32 %v582_v16, 0.0  ;;  %v585_v21 = vadd.f32 %v584_v19, %v1800_v18  ;;  %v586_v22 = vpop.f32.mrb[15].mxu1 }
 0x112   :  { %v643_v24 = vmax.f32 %v585_v21, 0.0 }
 0x114   :  { %v1803_v25 = vpack.c.bf16 %v643_v24, %v640_v20 }
 0x115   :  { %v589_v28 = vpop.f32.mrb[16].mxu1 }
 0x116   :  { %v590_v29 = vadd.f32 %v589_v28, %v1805_v27  ;;  %v591_v30 = vpop.f32.mrb[17].mxu1 }
 0x117   :  { %v592_v32 = vpop.f32.mrb[18].mxu1 }
 0x118   :  { %v646_v33 = vmax.f32 %v590_v29, 0.0  ;;  %v593_v34 = vadd.f32 %v592_v32, %v1808_v31  ;;  %v594_v36 = vpop.f32.mrb[19].mxu1 }
 0x11a   :  { %v649_v37 = vmax.f32 %v593_v34, 0.0 }
 0x11c   :  { %v1811_v39 = vpack.c.bf16 %v649_v37, %v646_v33 }
 0x11d   :  { %v597_v41 = vpop.f32.mrb[20].mxu1 }
 0x11e   :  { %v598_v42 = vadd.f32 %v597_v41, %v1813_v40  ;;  %v599_v43 = vpop.f32.mrb[21].mxu1 }
 0x11f   :  { %v600_v46 = vpop.f32.mrb[22].mxu1 }
 0x120   :  { %v652_v47 = vmax.f32 %v598_v42, 0.0  ;;  %v601_v49 = vadd.f32 %v600_v46, %v1816_v45  ;;  %v602_v54 = vpop.f32.mrb[23].mxu1 }
 0x122   :  { %v655_v61 = vmax.f32 %v601_v49, 0.0 }
 0x124   :  { %v1819_v63 = vpack.c.bf16 %v655_v61, %v652_v47 }
 0x125   :  { %v605_v23 = vpop.f32.mrb[24].mxu1 }
 0x126   :  { %v606_v26 = vadd.f32 %v605_v23, %v1821_v14  ;;  %v607_v35 = vpop.f32.mrb[25].mxu1 }
 0x127   :  { %v608_v51 = vpop.f32.mrb[26].mxu1 }
 0x128   :  { %v658_v53 = vmax.f32 %v606_v26, 0.0  ;;  %v609_v55 = vadd.f32 %v608_v51, %v1824_v48  ;;  %v610_v57 = vpop.f32.mrb[27].mxu1 }
 0x12a   :  { %v661_v58 = vmax.f32 %v609_v55, 0.0 }
 0x12c   :  { %v1827_v59 = vpack.c.bf16 %v661_v58, %v658_v53 }
 0x12d   :  { %v613_v62 = vpop.f32.mrb[28].mxu1 }
 0x12e   :  { %v614_v2 = vadd.f32 %v613_v62, %v1829_v60  ;;  %v615_v3 = vpop.f32.mrb[29].mxu1 }
 0x12f   :  { %v616_v6 = vpop.f32.mrb[30].mxu1 }
 0x130   :  { %v664_v7 = vmax.f32 %v614_v2, 0.0  ;;  %v617_v8 = vadd.f32 %v616_v6, %v1832_v4  ;;  %v618_v9 = vpop.f32.mrb[31].mxu1 }
 0x132   :  { %v667_v10 = vmax.f32 %v617_v8, 0.0 }
 0x134   :  { %v1835_v15 = vpack.c.bf16 %v667_v10, %v664_v7 }
 0x159   :  { %v444_v16 = vpop.f32.mrb[0].mxu0 }
 0x15a   :  { %v445_v17 = vadd.f32 %v444_v16, %v1773_v52  ;;  %v446_v19 = vpop.f32.mrb[1].mxu0 }
 0x15b   :  { %v447_v20 = vadd.f32 %v446_v19, %v1773_v52  ;;  %v448_v21 = vpop.f32.mrb[2].mxu0 }
 0x15c   :  { %v449_v22 = vadd.f32 %v448_v21, %v1776_v11  ;;  %v450_v24 = vpop.f32.mrb[3].mxu0  ;;  %v620_v29 = vmax.f32 %v445_v17, 0.0 }
 0x15d   :  { %v451_v28 = vadd.f32 %v450_v24, %v1776_v11  ;;  %v621_v32 = vmax.f32 %v447_v20, 0.0 }
 0x15e   :  { %v623_v30 = vmax.f32 %v449_v22, 0.0 }
 0x15f   :  { %v624_v33 = vmax.f32 %v451_v28, 0.0 }
 0x160   :  { %v676_v34 = vpack.c.bf16 %v623_v30, %v620_v29 }
 0x161   :  { %v677_v36 = vpack.c.bf16 %v624_v33, %v621_v32  ;;  %v454_v37 = vpop.f32.mrb[4].mxu0 }
 0x162   :  { %v455_v41 = vadd.f32 %v454_v37, %v1779_v38  ;;  %v456_v42 = vpop.f32.mrb[5].mxu0 }
 0x163   :  { %v457_v43 = vadd.f32 %v456_v42, %v1779_v38  ;;  %v458_v46 = vpop.f32.mrb[6].mxu0  ;;  %772 = vmatprep.subr.bf16.mxu1 %v677_v36 }
 0x164   :  { %v459_v52 = vadd.f32 %v458_v46, %v1784_v56  ;;  %v460_v47 = vpop.f32.mrb[7].mxu0  ;;  %773 = vmatpush1.bf16.msra.mxu1 %v676_v34  ;;  %v626_v49 = vmax.f32 %v455_v41, 0.0 }
 0x165   :  { %v461_v11 = vadd.f32 %v460_v47, %v1784_v56  ;;  %v627_v61 = vmax.f32 %v457_v43, 0.0 }
 0x166   :  { %v629_v54 = vmax.f32 %v459_v52, 0.0 }
 0x167   :  { %v630_v23 = vmax.f32 %v461_v11, 0.0 }
 0x168   :  { %v679_v26 = vpack.c.bf16 %v629_v54, %v626_v49 }
 0x169   :  { %v680_v35 = vpack.c.bf16 %v630_v23, %v627_v61  ;;  %v464_v51 = vpop.f32.mrb[8].mxu0 }
 0x16a   :  { %v465_v53 = vadd.f32 %v464_v51, %v1789_v1  ;;  %v466_v55 = vpop.f32.mrb[9].mxu0 }
 0x16b   :  { %v467_v38 = vadd.f32 %v466_v55, %v1789_v1  ;;  %v468_v57 = vpop.f32.mrb[10].mxu0  ;;  %774 = vmatprep.subr.bf16.mxu1 %v680_v35 }
 0x16c   :  { %v469_v58 = vadd.f32 %v468_v57, %v1792_v5  ;;  %v470_v62 = vpop.f32.mrb[11].mxu0  ;;  %775 = vmatpush1.bf16.msra.mxu1 %v679_v26  ;;  %v632_v2 = vmax.f32 %v465_v53, 0.0 }
 0x16d   :  { %v471_v56 = vadd.f32 %v470_v62, %v1792_v5  ;;  %v633_v6 = vmax.f32 %v467_v38, 0.0 }
 0x16e   :  { %v635_v3 = vmax.f32 %v469_v58, 0.0 }
 0x16f   :  { %v636_v7 = vmax.f32 %v471_v56, 0.0 }
 0x170   :  { %v682_v8 = vpack.c.bf16 %v635_v3, %v632_v2 }
 0x171   :  { %v683_v9 = vpack.c.bf16 %v636_v7, %v633_v6  ;;  %v474_v10 = vpop.f32.mrb[12].mxu0 }
 0x172   :  { %v475_v16 = vadd.f32 %v474_v10, %v1797_v13  ;;  %v476_v17 = vpop.f32.mrb[13].mxu0 }
 0x173   :  { %v477_v1 = vadd.f32 %v476_v17, %v1797_v13  ;;  %v478_v19 = vpop.f32.mrb[14].mxu0  ;;  %776 = vmatprep.subr.bf16.mxu1 %v683_v9 }
 0x174   :  { %v479_v20 = vadd.f32 %v478_v19, %v1800_v18  ;;  %v480_v21 = vpop.f32.mrb[15].mxu0  ;;  %777 = vmatpush1.bf16.msra.mxu1 %v682_v8  ;;  %v638_v22 = vmax.f32 %v475_v16, 0.0 }
 0x175   :  { %v481_v5 = vadd.f32 %v480_v21, %v1800_v18  ;;  %v639_v28 = vmax.f32 %v477_v1, 0.0 }
 0x176   :  { %v641_v24 = vmax.f32 %v479_v20, 0.0 }
 0x177   :  { %v642_v29 = vmax.f32 %v481_v5, 0.0 }
 0x178   :  { %v685_v30 = vpack.c.bf16 %v641_v24, %v638_v22 }
 0x179   :  { %v686_v32 = vpack.c.bf16 %v642_v29, %v639_v28  ;;  %v484_v33 = vpop.f32.mrb[16].mxu0 }
 0x17a   :  { %v485_v34 = vadd.f32 %v484_v33, %v1805_v27  ;;  %v486_v36 = vpop.f32.mrb[17].mxu0 }
 0x17b   :  { %v487_v13 = vadd.f32 %v486_v36, %v1805_v27  ;;  %v488_v37 = vpop.f32.mrb[18].mxu0  ;;  %778 = vmatprep.subr.bf16.mxu1 %v686_v32 }
 0x17c   :  { %v489_v41 = vadd.f32 %v488_v37, %v1808_v31  ;;  %v490_v42 = vpop.f32.mrb[19].mxu0  ;;  %779 = vmatpush1.bf16.msra.mxu1 %v685_v30  ;;  %v644_v43 = vmax.f32 %v485_v34, 0.0 }
 0x17d   :  { %v491_v18 = vadd.f32 %v490_v42, %v1808_v31  ;;  %v645_v52 = vmax.f32 %v487_v13, 0.0  ;;  %v1233_v13 = vld [vmem:[%s2009_s3] sm:$0xff]  }
 0x17e   :  { %v647_v46 = vmax.f32 %v489_v41, 0.0 }
 0x17f   :  { %v648_v47 = vmax.f32 %v491_v18, 0.0 }
 0x180   :  { %v688_v11 = vpack.c.bf16 %v647_v46, %v644_v43 }
 0x181   :  { %v689_v49 = vpack.c.bf16 %v648_v47, %v645_v52  ;;  %v494_v54 = vpop.f32.mrb[20].mxu0 }
 0x182   :  { %v495_v61 = vadd.f32 %v494_v54, %v1813_v40  ;;  %v496_v23 = vpop.f32.mrb[21].mxu0 }
 0x183   :  { %v497_v27 = vadd.f32 %v496_v23, %v1813_v40  ;;  %v498_v26 = vpop.f32.mrb[22].mxu0  ;;  %780 = vmatprep.subr.bf16.mxu1 %v689_v49 }
 0x184   :  { %v499_v35 = vadd.f32 %v498_v26, %v1816_v45  ;;  %v500_v51 = vpop.f32.mrb[23].mxu0  ;;  %781 = vmatpush1.bf16.msra.mxu1 %v688_v11  ;;  %v650_v53 = vmax.f32 %v495_v61, 0.0 }
 0x185   :  { %v501_v31 = vadd.f32 %v500_v51, %v1816_v45  ;;  %v651_v38 = vmax.f32 %v497_v27, 0.0 }
 0x186   :  { %v653_v55 = vmax.f32 %v499_v35, 0.0 }
 0x187   :  { %v654_v57 = vmax.f32 %v501_v31, 0.0 }
 0x188   :  { %v691_v58 = vpack.c.bf16 %v653_v55, %v650_v53 }
 0x189   :  { %v692_v62 = vpack.c.bf16 %v654_v57, %v651_v38  ;;  %v504_v56 = vpop.f32.mrb[24].mxu0 }
 0x18a   :  { %v505_v2 = vadd.f32 %v504_v56, %v1821_v14  ;;  %v506_v3 = vpop.f32.mrb[25].mxu0 }
 0x18b   :  { %v507_v40 = vadd.f32 %v506_v3, %v1821_v14  ;;  %v508_v6 = vpop.f32.mrb[26].mxu0  ;;  %782 = vmatprep.subr.bf16.mxu1 %v692_v62 }
 0x18c   :  { %v509_v7 = vadd.f32 %v508_v6, %v1824_v48  ;;  %v510_v8 = vpop.f32.mrb[27].mxu0  ;;  %783 = vmatpush1.bf16.msra.mxu1 %v691_v58  ;;  %v656_v9 = vmax.f32 %v505_v2, 0.0 }
 0x18d   :  { %v511_v45 = vadd.f32 %v510_v8, %v1824_v48  ;;  %v657_v16 = vmax.f32 %v507_v40, 0.0 }
 0x18e   :  { %v659_v10 = vmax.f32 %v509_v7, 0.0 }
 0x18f   :  { %v660_v17 = vmax.f32 %v511_v45, 0.0 }
 0x190   :  { %v694_v1 = vpack.c.bf16 %v659_v10, %v656_v9 }
 0x191   :  { %v695_v19 = vpack.c.bf16 %v660_v17, %v657_v16  ;;  %v514_v20 = vpop.f32.mrb[28].mxu0 }
 0x192   :  { %v515_v21 = vadd.f32 %v514_v20, %v1829_v60  ;;  %v516_v5 = vpop.f32.mrb[29].mxu0 }
 0x193   :  { %v517_v14 = vadd.f32 %v516_v5, %v1829_v60  ;;  %v518_v22 = vpop.f32.mrb[30].mxu0  ;;  %784 = vmatprep.subr.bf16.mxu1 %v695_v19  ;;  %v1234_v60 = vld [vmem:[%s2009_s3 + $0x8] sm:$0xff]  }
 0x194   :  { %v519_v24 = vadd.f32 %v518_v22, %v1832_v4  ;;  %v520_v28 = vpop.f32.mrb[31].mxu0  ;;  %785 = vmatpush1.bf16.msra.mxu1 %v694_v1  ;;  %v662_v29 = vmax.f32 %v515_v21, 0.0 }
 0x195   :  { %v521_v48 = vadd.f32 %v520_v28, %v1832_v4  ;;  %v663_v32 = vmax.f32 %v517_v14, 0.0 }
 0x196   :  { %v665_v30 = vmax.f32 %v519_v24, 0.0 }
 0x197   :  { %v666_v33 = vmax.f32 %v521_v48, 0.0 }
 0x198   :  { %v697_v34 = vpack.c.bf16 %v665_v30, %v662_v29 }
 0x199   :  { %v698_v36 = vpack.c.bf16 %v666_v33, %v663_v32 }
 0x19b   :  { %786 = vmatprep.subr.bf16.mxu1 %v698_v36 }
 0x19c   :  { %787 = vmatpush1.bf16.msra.mxu1 %v697_v34 }
 0x19d   :  { %1180 = vmatprep.subr.bf16.mxu1 %v1781_v50 }
 0x19f   :  { %805 = vmatmul.mubr.bf16.vlgmr.msra.gmra.mrb[32].mxu1 %v1233_v13 }
 0x1a0   :  { %1181 = vmatpush3.bf16.msra.mxu1 %v1781_v50  ;;  %814 = vmatprep.mubr.bf16.mxu1 %v1261_v44  ;;  %v1235_v50 = vld [vmem:[%s2009_s3 + $0x10] sm:$0xff]  }
 0x1a1   :  { %1182 = vmatprep.subr.bf16.mxu1 %v1787_v0 }
 0x1a4   :  { %1183 = vmatpush3.bf16.msra.mxu1 %v1787_v0  ;;  %v1236_v0 = vld [vmem:[%s2009_s3 + $0x18] sm:$0xff]   ;;  %s1263_s3 = smov [#allocation3]  }
 0x1a5   :  { %1184 = vmatprep.subr.bf16.mxu1 %v1795_v12  ;;  %s1105_s9 = sshll.u32 %s1263_s3, 4  ;;  %s1106_s9 = int_to_ptr.vmem [resolvable:$true] %s1105_s9 }
 0x1a6   :  { %s1237_s10 = scalar_lea.vmem %s1106_s9, 48  ;;  %s1241_s6 = scalar_lea.vmem %s1106_s9, 64 }
 0x1a7   :  { %815 = vmatmul.mubr.bf16.gmra.mrb[36].mxu1 %v1234_v60  ;;  %p1238_p0 = scmp.ne.s32.totalorder %s1106_s9, %s1237_s10  ;;  %p1242_p1 = scmp.lt.s32.totalorder %s1106_s9, %s1106_s9 }
 0x1a8   :  { %1185 = vmatpush3.bf16.msra.mxu1 %v1795_v12  ;;  %824 = vmatprep.mubr.bf16.mxu1 %v1261_v44  ;;  %v1902_v12 = vpop.permute.xlu1 %715  ;;  %p1243_p2 = scmp.lt.s32.totalorder %s1241_s6, %s1237_s10 }
 0x1a9   :  { %1186 = vmatprep.subr.bf16.mxu1 %v1803_v25 }
 0x1aa   :  { %p1244_p3 = por %p1243_p2, %p1242_p1 }
 0x1ac   :  { %1187 = vmatpush3.bf16.msra.mxu1 %v1803_v25  ;;  %p1245_p4 = pnand %p1244_p3, %p1238_p0 }
 0x1ad   :  { %1188 = vmatprep.subr.bf16.mxu1 %v1811_v39 }
 0x1af   :  { %825 = vmatmul.mubr.bf16.gmra.mrb[40].mxu1 %v1235_v50 }
 0x1b0   :  { %1189 = vmatpush3.bf16.msra.mxu1 %v1811_v39  ;;  %834 = vmatprep.mubr.bf16.mxu1 %v1261_v44  ;;  %v1900_v44 = vpop.permute.xlu0 %710  ;;  %v1906_v39 = vpop.permute.xlu1 %725 }
 0x1b1   :  { %1190 = vmatprep.subr.bf16.mxu1 %v1819_v63 }
 0x1b4   :  { %1191 = vmatpush3.bf16.msra.mxu1 %v1819_v63  ;;  %v1904_v25 = vpop.permute.xlu0 %720  ;;  %v1910_v4 = vpop.permute.xlu1 %949 }
 0x1b5   :  { %1192 = vmatprep.subr.bf16.mxu1 %v1827_v59 }
 0x1b7   :  { %835 = vmatmul.mubr.bf16.gmra.mrb[44].mxu1 %v1236_v0 }
 0x1b8   :  { %1193 = vmatpush3.bf16.msra.mxu1 %v1827_v59  ;;  %1196 = vmatprep.mubr.bf16.mxu1 %v1233_v13  ;;  %v1908_v63 = vpop.permute.xlu0 %944  ;;  %v1917_v47 = vpop.permute.xlu1 %954 }
 0x1b9   :  { %1194 = vmatprep.subr.bf16.mxu1 %v1835_v15 }
 0x1bc   :  { %1195 = vmatpush3.bf16.msra.mxu1 %v1835_v15  ;;  %v1914_v18 = vpop.permute.xlu0 %730  ;;  %v1927_v57 = vpop.permute.xlu1 %959 }
 0x1bf   :  { %1197 = vmatmul.mubr.bf16.vlgmr.msra.gmra.mrb[48].mxu1 %v1234_v60 }
 0x1c0   :  { %1200 = vmatprep.mubr.bf16.mxu1 %v1235_v50  ;;  %v1924_v31 = vpop.permute.xlu0 %735  ;;  %v1937_v19 = vpop.permute.xlu1 %964 }
 0x1c4   :  { %v1934_v16 = vpop.permute.xlu0 %740 }
 0x1c7   :  { %1201 = vmatmul.mubr.bf16.gmra.mrb[52].mxu1 %v1236_v0  ;;  %v1947_v0 = vpop.permute.xlu1 %969 }
 0x1c8   :  { %v1945_v50 = vpop.permute.xlu0 %745 }
 0x272   :  { %v806_v59 = vpop.f32.mrb[32].mxu1 }
 0x273   :  { %v807_v37 = vadd.f32 %v806_v59, %v1900_v44  ;;  %v808_v41 = vpop.f32.mrb[33].mxu1 }
 0x274   :  { %v809_v15 = vadd.f32 %v808_v41, %v1900_v44  ;;  %v810_v42 = vpop.f32.mrb[34].mxu1 }
 0x275   :  { %v910_v43 = vmax.f32 %v807_v37, 0.0  ;;  %v811_v46 = vadd.f32 %v810_v42, %v1902_v12  ;;  %v812_v52 = vpop.f32.mrb[35].mxu1 }
 0x276   :  { %v911_v11 = vmax.f32 %v809_v15, 0.0  ;;  %v813_v49 = vadd.f32 %v812_v52, %v1902_v12 }
 0x277   :  { %v913_v54 = vmax.f32 %v811_v46, 0.0  ;;  %v982_v23 = vmul.f32 %v1908_v63, %v910_v43 }
 0x278   :  { %v914_v61 = vmax.f32 %v813_v49, 0.0  ;;  %v983_v26 = vmul.f32 %v1908_v63, %v911_v11 }
 0x279   :  { %v985_v27 = vmul.f32 %v1910_v4, %v913_v54 }
 0x27a   :  { %v986_v35 = vmul.f32 %v1910_v4, %v914_v61  ;;  %v816_v51 = vpop.f32.mrb[36].mxu1 }
 0x27b   :  { %v1006_v53 = vadd.f32 %v985_v27, %v982_v23  ;;  %v817_v55 = vadd.f32 %v816_v51, %v1904_v25  ;;  %v818_v38 = vpop.f32.mrb[37].mxu1  ;;  %v1955_v51 = vpop.permute.xlu0 %974 }
 0x27c   :  { %v1019_v58 = vadd.f32 %v986_v35, %v983_v26  ;;  %v819_v62 = vadd.f32 %v818_v38, %v1904_v25  ;;  %v820_v56 = vpop.f32.mrb[38].mxu1 }
 0x27d   :  { %v916_v2 = vmax.f32 %v817_v55, 0.0  ;;  %v821_v3 = vadd.f32 %v820_v56, %v1906_v39  ;;  %v822_v40 = vpop.f32.mrb[39].mxu1 }
 0x27e   :  { %v917_v6 = vmax.f32 %v819_v62, 0.0  ;;  %v823_v7 = vadd.f32 %v822_v40, %v1906_v39  ;;  %v1959_v62 = vpop.permute.xlu1 %979 }
 0x27f   :  { %v988_v8 = vmul.f32 %v1917_v47, %v916_v2  ;;  %v919_v45 = vmax.f32 %v821_v3, 0.0 }
 0x280   :  { %v989_v9 = vmul.f32 %v1917_v47, %v917_v6  ;;  %v920_v10 = vmax.f32 %v823_v7, 0.0 }
 0x281   :  { %v1007_v17 = vadd.f32 %v1006_v53, %v988_v8  ;;  %v991_v1 = vmul.f32 %v1927_v57, %v919_v45  ;;  %v1060_v45 = vlaneseq }
 0x282   :  { %v1020_v20 = vadd.f32 %v1019_v58, %v989_v9  ;;  %v992_v21 = vmul.f32 %v1927_v57, %v920_v10  ;;  %v826_v5 = vpop.f32.mrb[40].mxu1 }
 0x283   :  { %v1008_v14 = vadd.f32 %v1007_v17, %v991_v1  ;;  %v827_v22 = vadd.f32 %v826_v5, %v1914_v18  ;;  %v828_v24 = vpop.f32.mrb[41].mxu1  ;;  %vm1096_vm2 = vcmp.lt.s32.totalorder %v1060_v45, 300 }
 0x284   :  { %v1021_v28 = vadd.f32 %v1020_v20, %v992_v21  ;;  %v829_v48 = vadd.f32 %v828_v24, %v1914_v18  ;;  %v830_v29 = vpop.f32.mrb[42].mxu1 }
 0x285   :  { %v922_v30 = vmax.f32 %v827_v22, 0.0  ;;  %v831_v32 = vadd.f32 %v830_v29, %v1924_v31  ;;  %v832_v33 = vpop.f32.mrb[43].mxu1 }
 0x286   :  { %v923_v34 = vmax.f32 %v829_v48, 0.0  ;;  %v833_v36 = vadd.f32 %v832_v33, %v1924_v31 }
 0x287   :  { %v994_v13 = vmul.f32 %v1937_v19, %v922_v30  ;;  %v925_v60 = vmax.f32 %v831_v32, 0.0  ;;  %v1969_v30 = vshrl.u32 %v1060_v45, 7 }
 0x288   :  { %v995_v59 = vmul.f32 %v1937_v19, %v923_v34  ;;  %v926_v37 = vmax.f32 %v833_v36, 0.0 }
 0x289   :  { %v1009_v41 = vadd.f32 %v1008_v14, %v994_v13  ;;  %v997_v15 = vmul.f32 %v1947_v0, %v925_v60 }
 0x28a   :  { %v1022_v42 = vadd.f32 %v1021_v28, %v995_v59  ;;  %v998_v43 = vmul.f32 %v1947_v0, %v926_v37  ;;  %v836_v46 = vpop.f32.mrb[44].mxu1  ;;  %v1062_v37 = vsub.s32 0, %v1969_v30 }
 0x28b   :  { %v1010_v52 = vadd.f32 %v1009_v41, %v997_v15  ;;  %v837_v11 = vadd.f32 %v836_v46, %v1934_v16  ;;  %v838_v49 = vpop.f32.mrb[45].mxu1 }
 0x28c   :  { %v1023_v54 = vadd.f32 %v1022_v42, %v998_v43  ;;  %v839_v61 = vadd.f32 %v838_v49, %v1934_v16  ;;  %v840_v23 = vpop.f32.mrb[46].mxu1  ;;  %v1058_v43 = vpop.permute.xlu0 %1057 }
 0x28d   :  { %v928_v27 = vmax.f32 %v837_v11, 0.0  ;;  %v841_v26 = vadd.f32 %v840_v23, %v1945_v50  ;;  %v842_v35 = vpop.f32.mrb[47].mxu1 }
 0x28e   :  { %v929_v53 = vmax.f32 %v839_v61, 0.0  ;;  %v843_v55 = vadd.f32 %v842_v35, %v1945_v50  ;;  %v1063_v35 = vrot.slane %v1058_v43, %v1062_v37 }
 0x28f   :  { %v1000_v38 = vmul.f32 %v1955_v51, %v928_v27  ;;  %v931_v58 = vmax.f32 %v841_v26, 0.0 }
 0x290   :  { %v1001_v56 = vmul.f32 %v1955_v51, %v929_v53  ;;  %v932_v2 = vmax.f32 %v843_v55, 0.0 }
 0x291   :  { %v1011_v3 = vadd.f32 %v1010_v52, %v1000_v38  ;;  %v1003_v40 = vmul.f32 %v1959_v62, %v931_v58 }
 0x292   :  { %v1024_v6 = vadd.f32 %v1023_v54, %v1001_v56  ;;  %v1004_v7 = vmul.f32 %v1959_v62, %v932_v2  ;;  %v1198_v8 = vpop.f32.mrb[48].mxu1 }
 0x293   :  { %v1012_v9 = vadd.f32 %v1011_v3, %v1003_v40  ;;  %v888_v10 = vadd.f32 %v1198_v8, %v1904_v25  ;;  %v879_v17 = vpop.f32.mrb[49].mxu1 }
 0x294   :  { %v1025_v1 = vadd.f32 %v1024_v6, %v1004_v7  ;;  %v880_v20 = vadd.f32 %v879_v17, %v1900_v44  ;;  %v1199_v21 = vpop.f32.mrb[50].mxu1 }
 0x295   :  { %v1013_v5 = vrot.slane %v1012_v9, 4  ;;  %v918_v14 = vmax.f32 %v888_v10, 0.0  ;;  %v891_v22 = vadd.f32 %v1199_v21, %v1906_v39  ;;  %v882_v24 = vpop.f32.mrb[51].mxu1 }
 0x296   :  { %v1026_v28 = vrot.slane %v1025_v1, 4  ;;  %v912_v48 = vmax.f32 %v880_v20, 0.0  ;;  %v883_v29 = vadd.f32 %v882_v24, %v1902_v12 }
 0x297   :  { %v1014_v32 = vadd.f32 %v1013_v5, %v1012_v9  ;;  %v921_v33 = vmax.f32 %v891_v22, 0.0  ;;  %v990_v13 = vmul.f32 %v1917_v47, %v918_v14 }
 0x298   :  { %v1027_v25 = vadd.f32 %v1026_v28, %v1025_v1  ;;  %v984_v34 = vmul.f32 %v1908_v63, %v912_v48  ;;  %v915_v36 = vmax.f32 %v883_v29, 0.0 }
 0x299   :  { %v1015_v44 = vrot.slane %v1014_v32, 2  ;;  %v993_v41 = vmul.f32 %v1927_v57, %v921_v33 }
 0x29a   :  { %v1028_v60 = vrot.slane %v1027_v25, 2  ;;  %v987_v39 = vmul.f32 %v1910_v4, %v915_v36  ;;  %v1202_v59 = vpop.f32.mrb[52].mxu1  ;;  %v1033_v63 = vsel %vm1032_vm1, %v984_v34, 0.0  ;;  %v1036_v4 = vsel %vm1032_vm1, %v990_v13, 0.0 }
 0x29b   :  { %v1016_v12 = vadd.f32 %v1015_v44, %v1014_v32  ;;  %v904_v15 = vadd.f32 %v1202_v59, %v1934_v16  ;;  %v895_v42 = vpop.f32.mrb[53].mxu1  ;;  %v1038_v55 = vsel %vm1032_vm1, %v993_v41, 0.0 }
 0x29c   :  { %v1029_v46 = vadd.f32 %v1028_v60, %v1027_v25  ;;  %v1034_v52 = vsel %vm1032_vm1, %v987_v39, 0.0  ;;  %v896_v47 = vadd.f32 %v895_v42, %v1914_v18  ;;  %v1203_v11 = vpop.f32.mrb[54].mxu1 }
 0x29d   :  { %v1017_v49 = vrot.slane %v1016_v12, 1  ;;  %v1035_v54 = vadd.f32 %v1034_v52, %v1033_v63  ;;  %v907_v61 = vadd.f32 %v1203_v11, %v1945_v50  ;;  %v898_v23 = vpop.f32.mrb[55].mxu1  ;;  %v930_v27 = vmax.f32 %v904_v15, 0.0 }
 0x29e   :  { %v1030_v57 = vrot.slane %v1029_v46, 1  ;;  %v924_v16 = vmax.f32 %v896_v47, 0.0  ;;  %v899_v26 = vadd.f32 %v898_v23, %v1924_v31 }
 0x29f   :  { %v1018_v53 = vadd.f32 %v1017_v49, %v1016_v12  ;;  %v1037_v38 = vadd.f32 %v1036_v4, %v1035_v54  ;;  %v933_v56 = vmax.f32 %v907_v61, 0.0  ;;  %v1002_v50 = vmul.f32 %v1955_v51, %v930_v27 }
 0x2a0   :  { %v1031_v58 = vadd.f32 %v1030_v57, %v1029_v46  ;;  %v996_v18 = vmul.f32 %v1937_v19, %v924_v16  ;;  %v927_v2 = vmax.f32 %v899_v26, 0.0  ;;  %v1262_v51 = vmov 1966171168  }
 0x2a1   :  { %v1039_v3 = vadd.f32 %v1038_v55, %v1037_v38  ;;  %v1064_v40 = vadd.f32 %v1063_v35, %v1018_v53  ;;  %v1005_v9 = vmul.f32 %v1959_v62, %v933_v56  ;;  %v1044_v19 = vsel %vm1032_vm1, %v1002_v50, 0.0 }
 0x2a2   :  { %v1040_v6 = vsel %vm1032_vm1, %v996_v18, 0.0  ;;  %v999_v7 = vmul.f32 %v1947_v0, %v927_v2  ;;  %v1065_v8 = vadd.f32 %v1063_v35, %v1031_v58  ;;  %v1072_v22 = vunpack.c.l.s4 %v1262_v51 }
 0x2a3   :  { %v1041_v31 = vadd.f32 %v1040_v6, %v1039_v3  ;;  %v1046_v21 = vsel %vm1032_vm1, %v1005_v9, 0.0 }
 0x2a4   :  { %v1042_v10 = vsel %vm1032_vm1, %v999_v7, 0.0  ;;  %v1070_v17 = vcombine.low %v1064_v40, %v1065_v8  ;;  %v1073_v0 = vunpack.c.0.s8 %v1072_v22 }
 0x2a5   :  { %v1043_v1 = vadd.f32 %v1042_v10, %v1041_v31 }
 0x2a6   :  { %v1076_v62 = vsub.s32 %v1073_v0, %v1969_v30 }
 0x2a7   :  { %v1045_v20 = vadd.f32 %v1044_v19, %v1043_v1 }
 0x2a8   :  { %v1077_v25 = vrot.slane %v1070_v17, %v1076_v62 }
 0x2a9   :  { %v1047_v5 = vadd.f32 %v1046_v21, %v1045_v20 }
 0x2ab   :  { %v1048_v14 = vrot.slane %v1047_v5, 4 }
 0x2ad   :  { %v1049_v24 = vadd.f32 %v1048_v14, %v1047_v5 }
 0x2af   :  { %v1050_v28 = vrot.slane %v1049_v24, 2 }
 0x2b1   :  { %v1051_v48 = vadd.f32 %v1050_v28, %v1049_v24 }
 0x2b3   :  { %v1052_v29 = vrot.slane %v1051_v48, 1 }
 0x2b5   :  { %v1053_v32 = vadd.f32 %v1052_v29, %v1051_v48 }
 0x2b7   :  { %v1066_v33 = vadd.f32 %v1063_v35, %v1053_v32 }
 0x2b9   :  { %v1084_v34 = vrot.slane %v1066_v33, %v1076_v62 }
 0x2bb   :  { %v1085_v36 = vcombine.low %v1077_v25, %v1084_v34 }
 0x2bd   :  { %v1092_v44 = vrot.slane %v1085_v36, %v1076_v62 }
 0x2bf   :  { %1098 = vst.msk [vmem:[#allocation3] sm:$0x7] %vm1096_vm2, %v1092_v44 }
 0x2c0   :  { %1248 = shalt.err (!%p1245_p4)
}
 0x2c1   :  { %s1249_s13 = scalar_lea.hbm %s2013_s7, 48 }
 0x2c2   :  { %p1250_p5 = scmp.ne.s32.totalorder %s2013_s7, %s1249_s13  ;;  %p1253_p6 = scmp.lt.u32.totalorder %s1249_s13, %s2013_s7 }
 0x2c4   :  { %p1255_p7 = pnand %p1253_p6, %p1250_p5 }
 0x2c6   :  { %1258 = shalt.err (!%p1255_p7)
}
 0x2c7   :  { %1108 = dma.vmem_to_hbm [thread:$0]  %s1106_s9, 48, %s2013_s7, [#allocation4]  }
 0x2c8   :  { %1259 = dma.done.wait [#allocation4], 48  }
 0x2c9   :  { %1260 = vsyncadd [#allocation4], 4294967248 }
 0x2ca   :  { %1112 = vsyncpa [#allocation4], 1 }

</bundles_post_ra>
